<compile_context>
chip_gen: v7x
topology: tpu7x:2x2x1
jax: 0.10.0
libtpu: 0.0.40
codegen_flags: <defaults>
</compile_context>

<pallas_src>
import functools

import jax
import jax.numpy as jnp
from jax.experimental import pallas as pl
from jax.experimental.pallas import tpu as pltpu


def _round_up(x, m):
    return (x + m - 1) // m * m


def _temporal_block_kernel(*refs, K, dilation, P, P_pad, H_pad, TL,
                           has_downsample):
    if has_downsample:
        (x_halo_ref, x_main_ref, w1_ref, b1_ref, w2_ref, b2_ref,
         wd_ref, bd_ref, y_ref, x_buf, h_buf) = refs
    else:
        (x_halo_ref, x_main_ref, w1_ref, b1_ref, w2_ref, b2_ref,
         y_ref, x_buf, h_buf) = refs
        wd_ref = bd_ref = None

    Cin_p = x_buf.shape[1]
    Cout_p = h_buf.shape[1]
    M1 = P_pad + TL          # rows of h1 produced (P_pad history rows + TL rows)
    base = P_pad - P         # >= 0 : offset of the first conv tap

    # --- stage halo + current time rows contiguously (aligned offsets) -------
    x_buf[:H_pad, :] = x_halo_ref[...].reshape(H_pad, Cin_p)
    x_buf[H_pad:, :] = x_main_ref[...].reshape(TL, Cin_p)

    # --- conv1 (causal dilated) as ONE matmul over a K-tap slab --------------
    slab1 = jnp.concatenate(
        [x_buf[base + t * dilation: base + t * dilation + M1, :]
         for t in range(K)], axis=-1).astype(jnp.bfloat16)     # (M1, K*Cin_p)
    h1 = jnp.dot(slab1, w1_ref[...], preferred_element_type=jnp.float32)
    h1 = jnp.maximum(h1 + b1_ref[...], 0.0)                    # f32 epilogue
    # dropout1: identity (eval / inference mode)

    # h1 rows whose *global* time index is negative act as conv2's zero
    # left-padding (PyTorch zero-pads h1; it is NOT relu(bias) there).
    li = pl.program_id(1)
    gt = li * TL - P_pad + jax.lax.broadcasted_iota(jnp.int32, (M1, Cout_p), 0)
    h_buf[...] = jnp.where(gt >= 0, h1, 0.0)

    # --- conv2 (causal dilated) as ONE matmul over a K-tap slab --------------
    slab2 = jnp.concatenate(
        [h_buf[base + t * dilation: base + t * dilation + TL, :]
         for t in range(K)], axis=-1).astype(jnp.bfloat16)     # (TL, K*Cout_p)
    h2 = jnp.dot(slab2, w2_ref[...], preferred_element_type=jnp.float32)
    h2 = jnp.maximum(h2 + b2_ref[...], 0.0)                    # f32 epilogue
    # dropout2: identity (eval / inference mode)

    # --- residual branch ------------------------------------------------------
    if has_downsample:
        res = jnp.dot(x_buf[H_pad:, :].astype(jnp.bfloat16), wd_ref[...],
                      preferred_element_type=jnp.float32) + bd_ref[...]
    else:
        res = x_main_ref[...].reshape(TL, Cout_p)              # identity, f32

    y_ref[...] = jnp.maximum(h2 + res, 0.0).reshape(1, TL, Cout_p)


def temporal_block(x_ncl, params, *, kernel_size, stride, dilation, padding,
                   max_time_tile=256):
    """x_ncl: (N, Cin, L) float32, PyTorch NCW layout. Returns (N, Cout, L)."""
    assert stride == 1, "TCN TemporalBlock uses stride=1"
    assert padding == dilation * (kernel_size - 1), \
        "residual add requires padding == dilation*(kernel_size-1)"

    w1, b1, w2, b2 = params["w1"], params["b1"], params["w2"], params["b2"]
    N, Cin, L = x_ncl.shape
    K = kernel_size
    Cout = w1.shape[2]
    P = padding
    has_downsample = (Cin != Cout)

    LANE, SUB = 128, 8
    Cin_p = _round_up(Cin, LANE)
    Cout_p = _round_up(Cout, LANE)
    P_pad = _round_up(max(P, 1), SUB)          # aligned history for conv2
    H_pad = 2 * P_pad                          # aligned input halo (>= 2*P)
    TL = min(_round_up(max_time_tile, SUB), _round_up(L, SUB))
    L_pad = _round_up(L, TL)
    n_lt = L_pad // TL

    # ---- layout: NCW -> NWC (time-major, lane-dense channels) ---------------
    x_nwc = jnp.transpose(x_ncl, (0, 2, 1)).astype(jnp.float32)
    x_nwc = jnp.pad(x_nwc, ((0, 0), (0, L_pad - L), (0, Cin_p - Cin)))
    x_full = jnp.pad(x_nwc, ((0, 0), (H_pad, 0), (0, 0)))      # causal zeros
    x_main = x_full[:, H_pad:, :]                              # (N, L_pad, Cin_p)
    x_halo = jnp.stack(                                        # (N, n_lt, H_pad, Cin_p)
        [x_full[:, li * TL: li * TL + H_pad, :] for li in range(n_lt)], axis=1)
    # TODO(synk): accepting NWC inputs directly (and fusing the pad) would
    # remove these wrapper-side HBM round trips.

    # ---- weights: pad channels, fold K taps into the contraction dim, bf16 --
    def fold_taps(w, ci_p, co_p):
        k, ci, co = w.shape
        w = jnp.pad(w, ((0, 0), (0, ci_p - ci), (0, co_p - co)))
        return w.reshape(k * ci_p, co_p).astype(jnp.bfloat16)

    def pad_b(b, co_p):
        return jnp.pad(b, ((0, 0), (0, co_p - b.shape[1]))).astype(jnp.float32)

    w1_f = fold_taps(w1, Cin_p, Cout_p)
    w2_f = fold_taps(w2, Cout_p, Cout_p)
    b1_p = pad_b(b1, Cout_p)
    b2_p = pad_b(b2, Cout_p)

    args = [x_halo, x_main, w1_f, b1_p, w2_f, b2_p]
    in_specs = [
        pl.BlockSpec((1, 1, H_pad, Cin_p), lambda n, l: (n, l, 0, 0)),
        pl.BlockSpec((1, TL, Cin_p), lambda n, l: (n, l, 0)),
        pl.BlockSpec((K * Cin_p, Cout_p), lambda n, l: (0, 0)),
        pl.BlockSpec((1, Cout_p), lambda n, l: (0, 0)),
        pl.BlockSpec((K * Cout_p, Cout_p), lambda n, l: (0, 0)),
        pl.BlockSpec((1, Cout_p), lambda n, l: (0, 0)),
    ]
    wd_bytes = 0
    if has_downsample:
        wd = jnp.pad(params["wd"],
                     ((0, Cin_p - Cin), (0, Cout_p - Cout))).astype(jnp.bfloat16)
        bd = pad_b(params["bd"], Cout_p)
        args += [wd, bd]
        in_specs += [
            pl.BlockSpec((Cin_p, Cout_p), lambda n, l: (0, 0)),
            pl.BlockSpec((1, Cout_p), lambda n, l: (0, 0)),
        ]
        wd_bytes = Cin_p * Cout_p * 2
    else:
        assert Cin_p == Cout_p

    # ---- advisory cost + explicit VMEM budget (v7x-safe) ---------------------
    flops = 2 * N * L_pad * Cout_p * (K * Cin_p + K * Cout_p
                                      + (Cin_p if has_downsample else 0))
    bytes_accessed = ((x_main.size + x_halo.size) * 4
                      + N * L_pad * Cout_p * 4
                      + (w1_f.size + w2_f.size) * 2
                      + (b1_p.size + b2_p.size) * 4 + wd_bytes)
    block_bytes = 2 * 4 * (TL * Cin_p + H_pad * Cin_p + TL * Cout_p)  # dbl-buf
    weight_bytes = 2 * (w1_f.size + w2_f.size) + wd_bytes + 4 * 3 * Cout_p
    scratch_bytes = 4 * ((H_pad + TL) * Cin_p + (P_pad + TL) * Cout_p)
    vmem_limit = int(min(48 * 1024 * 1024,
                         max(16 * 1024 * 1024,
                             2 * (block_bytes + weight_bytes + scratch_bytes))))

    kern = functools.partial(_temporal_block_kernel, K=K, dilation=dilation,
                             P=P, P_pad=P_pad, H_pad=H_pad, TL=TL,
                             has_downsample=has_downsample)

    y_p = pl.pallas_call(
        kern,
        out_shape=jax.ShapeDtypeStruct((N, L_pad, Cout_p), jnp.float32),
        grid=(N, n_lt),
        in_specs=in_specs,
        out_specs=pl.BlockSpec((1, TL, Cout_p), lambda n, l: (n, l, 0)),
        scratch_shapes=[
            pltpu.VMEM((H_pad + TL, Cin_p), jnp.float32),
            pltpu.VMEM((P_pad + TL, Cout_p), jnp.float32),
        ],
        compiler_params=pltpu.CompilerParams(
            dimension_semantics=("parallel", "parallel"),
            vmem_limit_bytes=vmem_limit),
        cost_estimate=pl.CostEstimate(flops=int(flops), transcendentals=0,
                                      bytes_accessed=int(bytes_accessed)),
    )(*args)

    return jnp.transpose(y_p[:, :L, :Cout], (0, 2, 1))


def reference_forward(x_ncl, params, *, kernel_size, dilation, padding):
    """Plain-JAX f32 reference (same math as the PyTorch module in eval mode)."""
    P = padding

    def causal_conv(x, w_kio, b):                 # x: (N, C, L), w: (K, C, Cout)
        N, C, L = x.shape
        xp = jnp.pad(x, ((0, 0), (0, 0), (P, 0)))
        out = jnp.zeros((N, w_kio.shape[2], L), jnp.float32)
        for t in range(kernel_size):
            xs = xp[:, :, t * dilation: t * dilation + L]
            out = out + jnp.einsum("ncl,cf->nfl", xs, w_kio[t])
        return out + b.reshape(1, -1, 1)

    h1 = jnp.maximum(causal_conv(x_ncl, params["w1"], params["b1"]), 0.0)
    h2 = jnp.maximum(causal_conv(h1, params["w2"], params["b2"]), 0.0)
    if "wd" in params:
        res = jnp.einsum("ncl,cf->nfl", x_ncl, params["wd"]) \
            + params["bd"].reshape(1, -1, 1)
    else:
        res = x_ncl
    return jnp.maximum(h2 + res, 0.0)


def _make_params(key, Cin, Cout, K, has_ds):
    k = jax.random.split(key, 6)
    p = {
        "w1": 0.01 * jax.random.normal(k[0], (K, Cin, Cout), jnp.float32),
        "b1": 0.05 * jax.random.uniform(k[1], (1, Cout), jnp.float32, -1.0, 1.0),
        "w2": 0.01 * jax.random.normal(k[2], (K, Cout, Cout), jnp.float32),
        "b2": 0.05 * jax.random.uniform(k[3], (1, Cout), jnp.float32, -1.0, 1.0),
    }
    if has_ds:
        p["wd"] = 0.01 * jax.random.normal(k[4], (Cin, Cout), jnp.float32)
        p["bd"] = 0.05 * jax.random.uniform(k[5], (1, Cout), jnp.float32, -1.0, 1.0)
    return p


if __name__ == "__main__":
    key = jax.random.PRNGKey(0)
    k_p1, k_x1, k_p2, k_x2 = jax.random.split(key, 4)

    # --- case 1: Cin != Cout (downsample branch active) ----------------------
    N, Cin, Cout, L = 2, 4, 8, 16
    K, stride, dilation = 3, 1, 2
    padding = (K - 1) * dilation
    params1 = _make_params(k_p1, Cin, Cout, K, has_ds=True)
    x1 = jax.random.normal(k_x1, (N, Cin, L), jnp.float32)

    y1 = temporal_block(x1, params1, kernel_size=K, stride=stride,
                        dilation=dilation, padding=padding)
    y1 = jax.block_until_ready(y1)
    if bool(jnp.isnan(y1).any()):            # host-side NaN check, like the module
        print("NaN detected in TemporalBlock output.")
    y1_ref = reference_forward(x1, params1, kernel_size=K,
                               dilation=dilation, padding=padding)
    assert y1.shape == (N, Cout, L)
    assert jnp.allclose(y1, y1_ref, atol=5e-3, rtol=5e-2), "mismatch (downsample)"

    # --- case 2: Cin == Cout (identity residual) ------------------------------
    N2, C2, L2 = 2, 8, 16
    K2, dilation2 = 2, 1
    padding2 = (K2 - 1) * dilation2
    params2 = _make_params(k_p2, C2, C2, K2, has_ds=False)
    x2 = jax.random.normal(k_x2, (N2, C2, L2), jnp.float32)

    y2 = temporal_block(x2, params2, kernel_size=K2, stride=1,
                        dilation=dilation2, padding=padding2)
    y2 = jax.block_until_ready(y2)
    if bool(jnp.isnan(y2).any()):
        print("NaN detected in TemporalBlock output.")
    y2_ref = reference_forward(x2, params2, kernel_size=K2,
                               dilation=dilation2, padding=padding2)
    assert y2.shape == (N2, C2, L2)
    assert jnp.allclose(y2, y2_ref, atol=5e-3, rtol=5e-2), "mismatch (identity)"

    print("KERNEL_OK")
</pallas_src>

<mosaic_0001>
module attributes {stable_mosaic.version = 11 : i64} {
  func.func @_temporal_block_kernel(%arg0: i32, %arg1: i32, %arg2: memref<1x1x16x128xf32, #tpu.memory_space<vmem>>, %arg3: memref<1x16x128xf32, #tpu.memory_space<vmem>>, %arg4: memref<384x128xbf16, #tpu.memory_space<vmem>>, %arg5: memref<1x128xf32, #tpu.memory_space<vmem>>, %arg6: memref<384x128xbf16, #tpu.memory_space<vmem>>, %arg7: memref<1x128xf32, #tpu.memory_space<vmem>>, %arg8: memref<128x128xbf16, #tpu.memory_space<vmem>>, %arg9: memref<1x128xf32, #tpu.memory_space<vmem>>, %arg10: memref<1x16x128xf32, #tpu.memory_space<vmem>>, %arg11: memref<32x128xf32, #tpu.memory_space<vmem>>, %arg12: memref<24x128xf32, #tpu.memory_space<vmem>>) attributes {dimension_semantics = [#tpu.dimension_semantics<parallel>, #tpu.dimension_semantics<parallel>], iteration_bounds = array<i64: 2, 1>, scalar_prefetch = 0 : i64, scratch_operands = 2 : i64, tpu.core_type = #tpu.core_type<tc>, window_params = [{transform_indices = @transform_0, window_bounds = array<i64: 1, 1, 16, 128>}, {transform_indices = @transform_1, window_bounds = array<i64: 1, 16, 128>}, {pipeline_mode = #tpu.pipeline_mode<synchronous>, transform_indices = @transform_2, window_bounds = array<i64: 384, 128>}, {pipeline_mode = #tpu.pipeline_mode<synchronous>, transform_indices = @transform_3, window_bounds = array<i64: 1, 128>}, {pipeline_mode = #tpu.pipeline_mode<synchronous>, transform_indices = @transform_4, window_bounds = array<i64: 384, 128>}, {pipeline_mode = #tpu.pipeline_mode<synchronous>, transform_indices = @transform_5, window_bounds = array<i64: 1, 128>}, {pipeline_mode = #tpu.pipeline_mode<synchronous>, transform_indices = @transform_6, window_bounds = array<i64: 128, 128>}, {pipeline_mode = #tpu.pipeline_mode<synchronous>, transform_indices = @transform_7, window_bounds = array<i64: 1, 128>}, {transform_indices = @transform_8, window_bounds = array<i64: 1, 16, 128>}]} {
    %c0 = arith.constant 0 : index
    %c0_0 = arith.constant 0 : index
    %c0_1 = arith.constant 0 : index
    %c0_2 = arith.constant 0 : index
    %0 = vector.load %arg2[%c0, %c0_0, %c0_1, %c0_2] : memref<1x1x16x128xf32, #tpu.memory_space<vmem>>, vector<1x1x16x128xf32>
    %1 = vector.shape_cast %0 : vector<1x1x16x128xf32> to vector<16x128xf32>
    %c0_3 = arith.constant 0 : index
    %c0_4 = arith.constant 0 : index
    %2 = vector.load %arg11[%c0_3, %c0_4] : memref<32x128xf32, #tpu.memory_space<vmem>>, vector<16x128xf32>
    tpu.vector_store %arg11[%c0_3, %c0_4], %1 {strides = array<i32>} : memref<32x128xf32, #tpu.memory_space<vmem>>, vector<16x128xf32>,
    %c0_5 = arith.constant 0 : index
    %c0_6 = arith.constant 0 : index
    %c0_7 = arith.constant 0 : index
    %3 = vector.load %arg3[%c0_5, %c0_6, %c0_7] : memref<1x16x128xf32, #tpu.memory_space<vmem>>, vector<1x16x128xf32>
    %4 = vector.shape_cast %3 : vector<1x16x128xf32> to vector<16x128xf32>
    %c16 = arith.constant 16 : index
    %c0_8 = arith.constant 0 : index
    %5 = vector.load %arg11[%c16, %c0_8] : memref<32x128xf32, #tpu.memory_space<vmem>>, vector<16x128xf32>
    tpu.vector_store %arg11[%c16, %c0_8], %4 {strides = array<i32>} : memref<32x128xf32, #tpu.memory_space<vmem>>, vector<16x128xf32>,
    %c4 = arith.constant 4 : index
    %c0_9 = arith.constant 0 : index
    %6 = vector.load %arg11[%c4, %c0_9] : memref<32x128xf32, #tpu.memory_space<vmem>>, vector<24x128xf32>
    %c6 = arith.constant 6 : index
    %c0_10 = arith.constant 0 : index
    %7 = vector.load %arg11[%c6, %c0_10] : memref<32x128xf32, #tpu.memory_space<vmem>>, vector<24x128xf32>
    %c8 = arith.constant 8 : index
    %c0_11 = arith.constant 0 : index
    %8 = vector.load %arg11[%c8, %c0_11] : memref<32x128xf32, #tpu.memory_space<vmem>>, vector<24x128xf32>
    %9 = tpu.concatenate %6, %7, %8 in 1 : vector<24x128xf32>, vector<24x128xf32>, vector<24x128xf32> -> vector<24x384xf32>
    %10 = arith.truncf %9 : vector<24x384xf32> to vector<24x384xbf16>
    %c0_12 = arith.constant 0 : index
    %c0_13 = arith.constant 0 : index
    %11 = vector.load %arg4[%c0_12, %c0_13] : memref<384x128xbf16, #tpu.memory_space<vmem>>, vector<384x128xbf16>
    %cst = arith.constant dense<0.000000e+00> : vector<24x128xf32>
    %12 = tpu.matmul %10, %11, %cst {dimension_numbers = #tpu.dot_dimension_numbers<[1], [0], [0], [1], [0, 0, 1, 1], [], []>} : vector<24x384xbf16>, vector<384x128xbf16>, vector<24x128xf32> -> vector<24x128xf32>
    %c0_14 = arith.constant 0 : index
    %c0_15 = arith.constant 0 : index
    %13 = vector.load %arg5[%c0_14, %c0_15] : memref<1x128xf32, #tpu.memory_space<vmem>>, vector<1x128xf32>
    %14 = vector.broadcast %13 : vector<1x128xf32> to vector<24x128xf32>
    %15 = arith.addf %12, %14 : vector<24x128xf32>
    %cst_16 = arith.constant 0.000000e+00 : f32
    %16 = vector.broadcast %cst_16 : f32 to vector<24x128xf32>
    %17 = arith.maximumf %15, %16 : vector<24x128xf32>
    %c16_i32 = arith.constant 16 : i32
    %18 = arith.muli %arg1, %c16_i32 : i32
    %c8_i32 = arith.constant 8 : i32
    %19 = arith.subi %18, %c8_i32 : i32
    %20 = tpu.iota {dimensions = array<i32: 0>} : vector<24x128xi32>
    %21 = vector.broadcast %19 : i32 to vector<24x128xi32>
    %22 = arith.addi %21, %20 : vector<24x128xi32>
    %c0_i32 = arith.constant 0 : i32
    %23 = vector.broadcast %c0_i32 : i32 to vector<24x128xi32>
    %24 = arith.cmpi sge, %22, %23 : vector<24x128xi32>
    %cst_17 = arith.constant 0.000000e+00 : f32
    %25 = vector.broadcast %cst_17 : f32 to vector<24x128xf32>
    %26 = arith.select %24, %17, %25 : vector<24x128xi1>, vector<24x128xf32>
    %c0_18 = arith.constant 0 : index
    %c0_19 = arith.constant 0 : index
    %27 = vector.load %arg12[%c0_18, %c0_19] : memref<24x128xf32, #tpu.memory_space<vmem>>, vector<24x128xf32>
    tpu.vector_store %arg12[%c0_18, %c0_19], %26 {strides = array<i32>} : memref<24x128xf32, #tpu.memory_space<vmem>>, vector<24x128xf32>,
    %c4_20 = arith.constant 4 : index
    %c0_21 = arith.constant 0 : index
    %28 = vector.load %arg12[%c4_20, %c0_21] : memref<24x128xf32, #tpu.memory_space<vmem>>, vector<16x128xf32>
    %c6_22 = arith.constant 6 : index
    %c0_23 = arith.constant 0 : index
    %29 = vector.load %arg12[%c6_22, %c0_23] : memref<24x128xf32, #tpu.memory_space<vmem>>, vector<16x128xf32>
    %c8_24 = arith.constant 8 : index
    %c0_25 = arith.constant 0 : index
    %30 = vector.load %arg12[%c8_24, %c0_25] : memref<24x128xf32, #tpu.memory_space<vmem>>, vector<16x128xf32>
    %31 = tpu.concatenate %28, %29, %30 in 1 : vector<16x128xf32>, vector<16x128xf32>, vector<16x128xf32> -> vector<16x384xf32>
    %32 = arith.truncf %31 : vector<16x384xf32> to vector<16x384xbf16>
    %c0_26 = arith.constant 0 : index
    %c0_27 = arith.constant 0 : index
    %33 = vector.load %arg6[%c0_26, %c0_27] : memref<384x128xbf16, #tpu.memory_space<vmem>>, vector<384x128xbf16>
    %cst_28 = arith.constant dense<0.000000e+00> : vector<16x128xf32>
    %34 = tpu.matmul %32, %33, %cst_28 {dimension_numbers = #tpu.dot_dimension_numbers<[1], [0], [0], [1], [0, 0, 1, 1], [], []>} : vector<16x384xbf16>, vector<384x128xbf16>, vector<16x128xf32> -> vector<16x128xf32>
    %c0_29 = arith.constant 0 : index
    %c0_30 = arith.constant 0 : index
    %35 = vector.load %arg7[%c0_29, %c0_30] : memref<1x128xf32, #tpu.memory_space<vmem>>, vector<1x128xf32>
    %36 = vector.broadcast %35 : vector<1x128xf32> to vector<16x128xf32>
    %37 = arith.addf %34, %36 : vector<16x128xf32>
    %cst_31 = arith.constant 0.000000e+00 : f32
    %38 = vector.broadcast %cst_31 : f32 to vector<16x128xf32>
    %39 = arith.maximumf %37, %38 : vector<16x128xf32>
    %c16_32 = arith.constant 16 : index
    %c0_33 = arith.constant 0 : index
    %40 = vector.load %arg11[%c16_32, %c0_33] : memref<32x128xf32, #tpu.memory_space<vmem>>, vector<16x128xf32>
    %41 = arith.truncf %40 : vector<16x128xf32> to vector<16x128xbf16>
    %c0_34 = arith.constant 0 : index
    %c0_35 = arith.constant 0 : index
    %42 = vector.load %arg8[%c0_34, %c0_35] : memref<128x128xbf16, #tpu.memory_space<vmem>>, vector<128x128xbf16>
    %cst_36 = arith.constant dense<0.000000e+00> : vector<16x128xf32>
    %43 = tpu.matmul %41, %42, %cst_36 {dimension_numbers = #tpu.dot_dimension_numbers<[1], [0], [0], [1], [0, 0, 1, 1], [], []>} : vector<16x128xbf16>, vector<128x128xbf16>, vector<16x128xf32> -> vector<16x128xf32>
    %c0_37 = arith.constant 0 : index
    %c0_38 = arith.constant 0 : index
    %44 = vector.load %arg9[%c0_37, %c0_38] : memref<1x128xf32, #tpu.memory_space<vmem>>, vector<1x128xf32>
    %45 = vector.broadcast %44 : vector<1x128xf32> to vector<16x128xf32>
    %46 = arith.addf %43, %45 : vector<16x128xf32>
    %47 = arith.addf %39, %46 : vector<16x128xf32>
    %cst_39 = arith.constant 0.000000e+00 : f32
    %48 = vector.broadcast %cst_39 : f32 to vector<16x128xf32>
    %49 = arith.maximumf %47, %48 : vector<16x128xf32>
    %50 = vector.shape_cast %49 : vector<16x128xf32> to vector<1x16x128xf32>
    %c0_40 = arith.constant 0 : index
    %c0_41 = arith.constant 0 : index
    %c0_42 = arith.constant 0 : index
    %51 = vector.load %arg10[%c0_40, %c0_41, %c0_42] : memref<1x16x128xf32, #tpu.memory_space<vmem>>, vector<1x16x128xf32>
    tpu.vector_store %arg10[%c0_40, %c0_41, %c0_42], %50 {strides = array<i32>} : memref<1x16x128xf32, #tpu.memory_space<vmem>>, vector<1x16x128xf32>,
    return
  }
  func.func @transform_0(%arg0: i32, %arg1: i32) -> (i32, i32, i32, i32) {
    %c0_i32 = arith.constant 0 : i32
    %c0_i32_0 = arith.constant 0 : i32
    %c0_i32_1 = arith.constant 0 : i32
    return %arg0, %arg1, %c0_i32, %c0_i32_0 : i32, i32, i32, i32
  }
  func.func @transform_1(%arg0: i32, %arg1: i32) -> (i32, i32, i32) {
    %c0_i32 = arith.constant 0 : i32
    %c0_i32_0 = arith.constant 0 : i32
    return %arg0, %arg1, %c0_i32 : i32, i32, i32
  }
  func.func @transform_2(%arg0: i32, %arg1: i32) -> (i32, i32) {
    %c0_i32 = arith.constant 0 : i32
    %c0_i32_0 = arith.constant 0 : i32
    %c0_i32_1 = arith.constant 0 : i32
    return %c0_i32, %c0_i32_0 : i32, i32
  }
  func.func @transform_3(%arg0: i32, %arg1: i32) -> (i32, i32) {
    %c0_i32 = arith.constant 0 : i32
    %c0_i32_0 = arith.constant 0 : i32
    %c0_i32_1 = arith.constant 0 : i32
    return %c0_i32, %c0_i32_0 : i32, i32
  }
  func.func @transform_4(%arg0: i32, %arg1: i32) -> (i32, i32) {
    %c0_i32 = arith.constant 0 : i32
    %c0_i32_0 = arith.constant 0 : i32
    %c0_i32_1 = arith.constant 0 : i32
    return %c0_i32, %c0_i32_0 : i32, i32
  }
  func.func @transform_5(%arg0: i32, %arg1: i32) -> (i32, i32) {
    %c0_i32 = arith.constant 0 : i32
    %c0_i32_0 = arith.constant 0 : i32
    %c0_i32_1 = arith.constant 0 : i32
    return %c0_i32, %c0_i32_0 : i32, i32
  }
  func.func @transform_6(%arg0: i32, %arg1: i32) -> (i32, i32) {
    %c0_i32 = arith.constant 0 : i32
    %c0_i32_0 = arith.constant 0 : i32
    %c0_i32_1 = arith.constant 0 : i32
    return %c0_i32, %c0_i32_0 : i32, i32
  }
  func.func @transform_7(%arg0: i32, %arg1: i32) -> (i32, i32) {
    %c0_i32 = arith.constant 0 : i32
    %c0_i32_0 = arith.constant 0 : i32
    %c0_i32_1 = arith.constant 0 : i32
    return %c0_i32, %c0_i32_0 : i32, i32
  }
  func.func @transform_8(%arg0: i32, %arg1: i32) -> (i32, i32, i32) {
    %c0_i32 = arith.constant 0 : i32
    %c0_i32_0 = arith.constant 0 : i32
    return %arg0, %arg1, %c0_i32 : i32, i32, i32
  }
}

</mosaic_0001>

<bundles_post_ra>
// kernel: tpu_custom_call.1
= control target key start
LH: loop header
LB: loop body
LE: loop exit
PB: predicated region body
PF: predicated region fallthrough
CT: control target
= control target key end

     0   :  { %s2420_s0 = inlined_call_operand.hbm [shape: f32[2,1,16,128], index: 0, kind: input, shape index: {}]   ;;  %s2421_s1 = inlined_call_operand.hbm [shape: f32[2,16,128], index: 1, kind: input, shape index: {}]   ;;  %s2422_s2 = inlined_call_operand.hbm [shape: bf16[384,128], index: 2, kind: input, shape index: {}]   ;;  %s2423_s3 = inlined_call_operand.vmem [shape: f32[1,128], index: 3, kind: input, shape index: {}]   ;;  %s2424_s4 = inlined_call_operand.hbm [shape: bf16[384,128], index: 4, kind: input, shape index: {}]   ;;  %s2425_s5 = inlined_call_operand.vmem [shape: f32[1,128], index: 5, kind: input, shape index: {}]   ;;  %s2426_s6 = inlined_call_operand.hbm [shape: bf16[128,128], index: 6, kind: input, shape index: {}]   ;;  %s2427_s7 = inlined_call_operand.vmem [shape: f32[1,128], index: 7, kind: input, shape index: {}]   ;;  %s2428_s8 = inlined_call_operand.hbm [shape: f32[2,16,128], index: 8, kind: output, shape index: {}]  }
   0x1   :  { %2435 = sst [smem:[#allocation21_spill]] %s2420_s0 }
   0x2   :  { %2436 = sst [smem:[#allocation22_spill]] %s2422_s2 }
   0x3   :  { %2437 = sst [smem:[#allocation23_spill]] %s2424_s4 }
   0x4   :  { %2438 = sst [smem:[#allocation24_spill]] %s2427_s7 }
   0x5   :  { %2439 = sst [smem:[#allocation25_spill]] %s2428_s8 }
   0x6   :  { %13 = vsyncpa [#allocation5], 0 }
   0x7   :  { %15 = vsyncpa [#allocation5 + $0x1], 0 }
   0x8   :  { %16 = vsyncpa [#allocation8], 0 }
   0x9   :  { %18 = vsyncpa [#allocation8 + $0x1], 0 }
   0xa   :  { %19 = vsyncpa [#allocation11], 0 }
   0xb   :  { %20 = vsyncpa [#allocation6], 0 }
   0xc   :  { %22 = vsyncpa [#allocation6 + $0x1], 0  ;;  %s2028_s27 = smov 0   ;;  %s2030_s28 = smov 0  }
   0xd   :  { %s2032_s29 = smov 0   ;;  %s2034_s30 = smov 0  }
   0xe   :  { %s2036_s9 = smov 0   ;;  %s2038_s10 = smov 0  }
   0xf LB: > { %2440 = sst [smem:[#allocation19_spill]] %s1947_s27  ;;  %s2059_s11 = sadd.s32 4294967295, %s1967_s10   ;;  %s1967_s10 = sphi %s2038_s10, %s28_s10   ;;  %s1963_s9 = sphi %s2036_s9, %s2469_s9   ;;  %s1959_s30 = sphi %s2034_s30, %s2468_s30   ;;  %s1955_s29 = sphi %s2032_s29, %s2467_s29   ;;  %s1951_s28 = sphi %s2030_s28, %s2466_s28   ;;  %s1947_s27 = sphi %s2028_s27, %s2465_s27  }
  0x10   : > { %s1343_s12 = sadd.s32 4294967294, %s1967_s10   ;;  %p62_p0 = scmp.ne.s32.totalorder %s1951_s28, %s1947_s27 }
  0x11   : > { %p2429_p1 = scmp.eq.s32.totalorder %s2059_s11, 0  ;;  %p248_p3 = scmp.eq.s32.totalorder %s1343_s12, 1 }
  0x12   : > { %p1344_p5 = scmp.ge.s32.totalorder %s1967_s10, 1  ;;  %p255_p7 = scmp.lt.s32.totalorder %s1967_s10, 3 }
  0x13   : > { %p2068_p4 = por %p2429_p1, %p62_p0  ;;  %p2073_p6 = por %p248_p3, %p62_p0 }
  0x14   : > { %p2078_p8 = pnand %p1344_p5, %p255_p7  ;;  %s1969_s16 = smov [#allocation9]  }
  0x15   : > { %s2441_s13 = scalar_select %p2068_p4, 1, 0 }
  0x16   : > { %s2442_s14 = scalar_select %p2073_p6, 1, 0 }
  0x17   : > { %s2444_s15 = scalar_select %p2078_p8, 1, 0 }
  0x18   : > { %2443 = sst [smem:[#allocation20_spill]] %s2442_s14  ;;  %s267_s17 = sshll.u32 %s1969_s16, 4  ;;  %s2082_s17 = int_to_ptr.vmem [resolvable:$true] %s267_s17 }
  0x19   : > { %p1585_p9 = pneg %p2078_p8  ;;  %s1970_s19 = smov [#allocation10]  }
  0x1a   : > { %s283_s20 = sshll.u32 %s1970_s19, 4  ;;  %s1971_s21 = smov [#allocation12]   ;;  %s2093_s20 = int_to_ptr.vmem [resolvable:$true] %s283_s20 }
  0x1b   : > { %p2089_p11 = pnand %p1585_p9, %p2429_p1  ;;  %s2095_s22 = sshll.u32 %s1971_s21, 4  ;;  %s300_s22 = int_to_ptr.vmem [resolvable:$true] %s2095_s22 }
  0x1c   : > { %s2446_s2 = sld [smem:[#allocation22_spill]] }
  0x1d   : > { %p2105_p13 = pneg %p2089_p11 }
  0x22   : > { %s1729_s25 = scalar_lea.hbm %s2446_s2, 3072 }
  0x23   : > { %p1730_p12 = scmp.ne.s32.totalorder %s2446_s2, %s1729_s25  ;;  %p1736_p5 = scmp.lt.u32.totalorder %s1729_s25, %s2446_s2 }
  0x25   : > { %p1732_p0 = pnand %p2105_p13, %p1730_p12 }
  0x27   : > { %p1733_p3 = pneg %p1732_p0 }
  0x29   : > { %p1738_p7 = pnand %p1736_p5, %p1733_p3 }
  0x2b   : > { %1741 = shalt.err (!%p1738_p7)
}
  0x2c   : > { %s1742_s23 = scalar_lea.vmem %s2082_s17, 3072  ;;  %p1750_p2 = scmp.lt.s32.totalorder %s2082_s17, %s2082_s17 }
  0x2d   : > { %p1743_p9 = scmp.ne.s32.totalorder %s2082_s17, %s1742_s23  ;;  %p1751_p6 = scmp.lt.s32.totalorder %s1742_s23, %s1742_s23 }
  0x2f   : > { %p1745_p10 = pnand %p1743_p9, %p2105_p13  ;;  %p1752_p12 = por %p1751_p6, %p1750_p2 }
  0x31   : > { %p1746_p1 = pneg %p1745_p10 }
  0x33   : > { %p1753_p0 = pnand %p1752_p12, %p1746_p1 }
  0x35   : > { %1756 = shalt.err (!%p1753_p0)
}
  0x36   : > { %s1972_s24 = smov 64   ;;  %s1973_s25 = smov 4  }
  0x37   : > { %1588 = dma.hbm_to_vmem [thread:$0]  (!%p2089_p11), %s2446_s2, 3072, %s2082_s17, [#allocation8], %s1972_s24, %s1972_s24, %s1973_s25  }
  0x38   : > { %s2448_s4 = sld [smem:[#allocation23_spill]] }
  0x3e   : > { %s1757_s23 = scalar_lea.hbm %s2448_s4, 3072 }
  0x3f   : > { %p1758_p1 = scmp.ne.s32.totalorder %s2448_s4, %s1757_s23  ;;  %p1764_p10 = scmp.lt.u32.totalorder %s1757_s23, %s2448_s4 }
  0x41   : > { %p1760_p2 = pnand %p1758_p1, %p2105_p13 }
  0x43   : > { %p1761_p6 = pneg %p1760_p2 }
  0x45   : > { %p1766_p3 = pnand %p1764_p10, %p1761_p6 }
  0x47   : > { %1769 = shalt.err (!%p1766_p3)
}
  0x48   : > { %s1770_s17 = scalar_lea.vmem %s2093_s20, 3072  ;;  %p1778_p12 = scmp.lt.s32.totalorder %s2093_s20, %s2093_s20 }
  0x49   : > { %p1771_p5 = scmp.ne.s32.totalorder %s2093_s20, %s1770_s17  ;;  %p1779_p0 = scmp.lt.s32.totalorder %s1770_s17, %s1770_s17 }
  0x4b   : > { %p1773_p7 = pnand %p1771_p5, %p2105_p13  ;;  %p1780_p1 = por %p1779_p0, %p1778_p12 }
  0x4d   : > { %p1774_p9 = pneg %p1773_p7 }
  0x4f   : > { %p1781_p2 = pnand %p1780_p1, %p1774_p9 }
  0x51   : > { %1784 = shalt.err (!%p1781_p2)
}
  0x52   : > { %1591 = dma.hbm_to_vmem [thread:$0]  (!%p2089_p11), %s2448_s4, 3072, %s2093_s20, [#allocation11], %s1972_s24, %s1972_s24, %s1973_s25  }
  0x53   : > { %s1785_s26 = scalar_lea.hbm %s2426_s6, 1024 }
  0x54   : > { %p1786_p6 = scmp.ne.s32.totalorder %s2426_s6, %s1785_s26  ;;  %p1792_p5 = scmp.lt.u32.totalorder %s1785_s26, %s2426_s6 }
  0x56   : > { %p1788_p10 = pnand %p1786_p6, %p2105_p13 }
  0x58   : > { %p1789_p3 = pneg %p1788_p10 }
  0x5a   : > { %p1794_p7 = pnand %p1792_p5, %p1789_p3 }
  0x5c   : > { %1797 = shalt.err (!%p1794_p7)
}
  0x5d   : > { %s1798_s17 = scalar_lea.vmem %s300_s22, 1024  ;;  %p1806_p1 = scmp.lt.s32.totalorder %s300_s22, %s300_s22 }
  0x5e   : > { %p1799_p9 = scmp.ne.s32.totalorder %s300_s22, %s1798_s17  ;;  %p1807_p2 = scmp.lt.s32.totalorder %s1798_s17, %s1798_s17 }
  0x60   : > { %p1801_p12 = pnand %p1799_p9, %p2105_p13  ;;  %p1808_p4 = por %p1807_p2, %p1806_p1 }
  0x62   : > { %p1802_p0 = pneg %p1801_p12 }
  0x64   : > { %p1809_p8 = pnand %p1808_p4, %p1802_p0 }
  0x66   : > { %1812 = shalt.err (!%p1809_p8)
}
  0x67   : > { %1594 = dma.hbm_to_vmem [thread:$0]  (!%p2089_p11), %s2426_s6, 1024, %s300_s22, [#allocation11], %s1972_s24, %s1972_s24, %s1973_s25  }
  0x68   : > { %s49_s18 = sadd.s32 1, %s1955_s29  ;;  %s40_s16 = sadd.s32 1, %s1963_s9 }
  0x69   : > { %p56_p4 = scmp.ne.s32.totalorder %s1955_s29, %s1951_s28  ;;  %p42_p8 = scmp.ge.s32.totalorder %s40_s16, 2 }
  0x6a   : > { %p57_p13 = scmp.eq.s32.totalorder %s1967_s10, 0  ;;  %p2449_p6 = scmp.eq.s32.totalorder %s2059_s11, 1 }
  0x6b   : > { %p1609_p3 = scmp.lt.s32.totalorder %s1967_s10, 2  ;;  %s2471_s16 = smov (%p42_p8, %s40_s16), 0 }
  0x6c   : > { %p2184_p10 = por %p2449_p6, %p56_p4  ;;  %p58_p5 = por %p57_p13, %p56_p4 }
  0x6d   : > { %s316_s27 = sand.u32 1, %s1955_s29   ;;  %s44_s14 = ssub.s32 %s1963_s9, %s2471_s16 }
  0x6e   : > { %p47_p11 = scmp.eq.s32.totalorder %s44_s14, 0  ;;  %s2194_s22 = sshll.u32 %s316_s27, 4 }
  0x6f   : > { %s1426_s24 = sshll.u32 %s1963_s9, 8  ;;  %s2451_s0 = sld [smem:[#allocation21_spill]] }
  0x70   : > { %s2198_s25 = scalar_select %p47_p11, %s1955_s29, %s49_s18  }
  0x71   : > { %s320_s21 = scalar_lea.vmem [#allocation4], %s2194_s22  ;;  %p2212_p7 = pnand %p1609_p3, %p58_p5 }
  0x72   : > { %s329_s23 = sshll.u32 %s320_s21, 4  ;;  %s2216_s20 = scalar_lea.sflag [#allocation5], %s316_s27  ;;  %s2208_s23 = int_to_ptr.vmem [resolvable:$true] %s329_s23 }
  0x73   : > { %p1815_p12 = pneg %p2212_p7 }
  0x75   : > { %s2205_s19 = scalar_lea.hbm %s2451_s0, %s1426_s24  ;;  %s1818_s26 = scalar_lea.hbm %s2451_s0, 512 }
  0x76   : > { %s1813_s7 = scalar_lea.hbm %s2205_s19, 256  ;;  %p1819_p2 = scmp.lt.u32.totalorder %s2205_s19, %s2451_s0 }
  0x77   : > { %p1814_p9 = scmp.ne.s32.totalorder %s2205_s19, %s1813_s7  ;;  %p1820_p4 = scmp.lt.u32.totalorder %s1818_s26, %s1813_s7 }
  0x78   : > { %p1822_p13 = scmp.lt.u32.totalorder %s1813_s7, %s2205_s19 }
  0x79   : > { %p1816_p0 = pnand %p1815_p12, %p1814_p9  ;;  %p1821_p8 = por %p1820_p4, %p1819_p2 }
  0x7b   : > { %p1817_p1 = pneg %p1816_p0  ;;  %p1823_p6 = por %p1822_p13, %p1821_p8 }
  0x7d   : > { %p1824_p3 = pnand %p1823_p6, %p1817_p1 }
  0x7f   : > { %1827 = shalt.err (!%p1824_p3)
}
  0x80   : > { %s1828_s27 = scalar_lea.vmem %s2208_s23, 256  ;;  %s1974_s18 = smov [#allocation4]  }
  0x81   : > { %p1829_p5 = scmp.ne.s32.totalorder %s2208_s23, %s1828_s27  ;;  %s1833_s14 = sshll.u32 %s1974_s18, 4  ;;  %s1834_s14 = int_to_ptr.vmem [resolvable:$false] %s1833_s14 }
  0x82   : > { %s1835_s12 = scalar_lea.vmem %s1834_s14, 512  ;;  %p1836_p0 = scmp.lt.s32.totalorder %s2208_s23, %s1834_s14 }
  0x83   : > { %p1831_p11 = pnand %p1829_p5, %p1815_p12  ;;  %p1837_p2 = scmp.lt.s32.totalorder %s1835_s12, %s1828_s27 }
  0x85   : > { %p1832_p9 = pneg %p1831_p11  ;;  %p1838_p4 = por %p1837_p2, %p1836_p0 }
  0x87   : > { %p1839_p8 = pnand %p1838_p4, %p1832_p9 }
  0x89   : > { %1842 = shalt.err (!%p1839_p8)
}
  0x8a   : > { %s1975_s7 = smov 128   ;;  %s1976_s26 = smov 8  }
  0x8b   : > { %1598 = dma.hbm_to_vmem [thread:$0]  (!%p2212_p7), %s2205_s19, 256, %s2208_s23, %s2216_s20, %s1975_s7, %s1975_s7, %s1976_s26  }
  0x8c   : > { %s2252_s18 = scalar_lea.hbm %s2421_s1, %s1426_s24  ;;  %s343_s14 = scalar_lea.vmem [#allocation7], %s2194_s22 }
  0x8d   : > { %s352_s12 = sshll.u32 %s343_s14, 4  ;;  %s339_s0 = sand.u32 1, %s1967_s10   ;;  %s2255_s12 = int_to_ptr.vmem [resolvable:$true] %s352_s12 }
  0x8e   : > { %s2258_s2 = scalar_lea.sflag [#allocation8], %s339_s0  ;;  %s1843_s4 = scalar_lea.hbm %s2252_s18, 256 }
  0x8f   : > { %p1844_p1 = scmp.ne.s32.totalorder %s2252_s18, %s1843_s4  ;;  %s1848_s23 = scalar_lea.hbm %s2421_s1, 512 }
  0x90   : > { %p1849_p3 = scmp.lt.u32.totalorder %s2252_s18, %s2421_s1  ;;  %p1850_p5 = scmp.lt.u32.totalorder %s1848_s23, %s1843_s4 }
  0x91   : > { %p1846_p13 = pnand %p1844_p1, %p1815_p12  ;;  %p1852_p9 = scmp.lt.u32.totalorder %s1843_s4, %s2252_s18 }
  0x92   : > { %p1851_p11 = por %p1850_p5, %p1849_p3 }
  0x93   : > { %p1847_p6 = pneg %p1846_p13 }
  0x94   : > { %p1853_p0 = por %p1852_p9, %p1851_p11 }
  0x96   : > { %p1854_p2 = pnand %p1853_p0, %p1847_p6 }
  0x98   : > { %1857 = shalt.err (!%p1854_p2)
}
  0x99   : > { %s1858_s0 = scalar_lea.vmem %s2255_s12, 256  ;;  %s1977_s22 = smov [#allocation7]  }
  0x9a   : > { %p1859_p4 = scmp.ne.s32.totalorder %s2255_s12, %s1858_s0  ;;  %s1863_s27 = sshll.u32 %s1977_s22, 4  ;;  %s1864_s27 = int_to_ptr.vmem [resolvable:$false] %s1863_s27 }
  0x9b   : > { %s1865_s14 = scalar_lea.vmem %s1864_s27, 512  ;;  %p1866_p13 = scmp.lt.s32.totalorder %s2255_s12, %s1864_s27 }
  0x9c   : > { %p1861_p8 = pnand %p1859_p4, %p1815_p12  ;;  %p1867_p3 = scmp.lt.s32.totalorder %s1865_s14, %s1858_s0 }
  0x9e   : > { %p1862_p1 = pneg %p1861_p8  ;;  %p1868_p5 = por %p1867_p3, %p1866_p13 }
  0xa0   : > { %p1869_p11 = pnand %p1868_p5, %p1862_p1 }
  0xa2   : > { %1872 = shalt.err (!%p1869_p11)
}
  0xa3   : > { %1601 = dma.hbm_to_vmem [thread:$0]  (!%p2212_p7), %s2252_s18, 256, %s2255_s12, %s2258_s2, %s1975_s7, %s1975_s7, %s1976_s26  }
  0xa4   : > { %p2453_p12 = scmp.ne.s32.totalorder %s2444_s15, 0 }
  0xa5   : > { %s2290_s4 = sand.u32 (!%p2453_p12), 1, %s1951_s28   ;;  %p2454_p6 = scmp.ne.s32.totalorder (!%p2453_p12), %s2441_s13, 0 }
  0xa6   : > { %364 = sbr.rel (%p2453_p12) target bundleno = 723 (0x2d3), region = 52  ;;  %s2293_s19 = sshll.u32 (!%p2453_p12), %s2290_s4, 4 }
  0xa7   : > { %s367_s17 = scalar_lea.sflag (!%p2453_p12), [#allocation5], %s2290_s4  ;;  %s370_s24 = scalar_lea.vmem (!%p2453_p12), [#allocation4], %s2293_s19 }
  0xad   : > { %1926 = dma.done.wait (%p2454_p6), %s367_s17, 256  }
  0xae   : > { %1928 = vsyncadd (%p2454_p6), %s367_s17, 4294967040  ;;  %s375_s2 = sand.u32 1, %s2059_s11   ;;  %s379_s7 = scalar_lea.vmem [#allocation7], %s2293_s19 }
  0xaf   : > { %s376_s15 = scalar_lea.sflag [#allocation8], %s375_s2 }
  0xb0   : > { %1930 = dma.done.wait (%p2454_p6), %s376_s15, 256  }
  0xb1   : > { %1932 = vsyncadd (%p2454_p6), %s376_s15, 4294967040  ;;  %p2455_p7 = scmp.eq.s32.totalorder %s2059_s11, 0 }
  0xb3   : > { %1934 = dma.done.wait (%p2455_p7), [#allocation8], 3072   ;;  %p2456_p9 = pmov %p2455_p7 }
  0xb4   : > { %p2457_p0 = pmov %p2455_p7 }
  0xb5   : > { %1936 = vsyncadd (%p2456_p9), [#allocation8], 4294964224 }
  0xb6   : > { %1938 = dma.done.wait (%p2457_p0), [#allocation11], 4096   ;;  %p2458_p2 = pmov %p2457_p0 }
  0xb7   : > { %v1978_v0 = vmov 0.0   ;;  %v1673_v1 = vld [vmem:[#allocation9 + $0x40] sm:$0xff]   ;;  %v1675_v3 = vld [vmem:[#allocation9 + $0x48] sm:$0xff]   ;;  %v1678_v6 = vld [vmem:[#allocation9 + $0x50] sm:$0xff]   ;;  %vm1979_vm0 = vmmov 0   ;;  %s2459_s20 = sld [smem:[#allocation24_spill]] }
  0xb8   : > { %1940 = vsyncadd (%p2458_p2), [#allocation11], 4294963200  ;;  %769 = vst [vmem:[#allocation3] sm:$0xff] %v1978_v0  ;;  %v1674_v2 = vld [vmem:[#allocation9] sm:$0xff]   ;;  %1429 = vmatprep.subr.bf16.mxu0 %v1673_v1  ;;  %v1677_v5 = vld [vmem:[#allocation9 + $0x8] sm:$0xff]   ;;  %s428_s21 = scalar_lea.vmem [#allocation13], %s2293_s19 }
  0xb9   : > { %1430 = vmatpush3.bf16.msra.mxu0 %v1674_v2  ;;  %v1676_v4 = vld [vmem:[#allocation9 + $0x80] sm:$0xff]   ;;  %v1679_v7 = vld [vmem:[#allocation9 + $0x88] sm:$0xff]   ;;  %v1680_v8 = vld [vmem:[#allocation9 + $0x10] sm:$0xff]   ;;  %s1201_s0 = sshll.u32 %s428_s21, 4  ;;  %s1428_s22 = sshll.u32 %s1959_s30, 8  ;;  %s2366_s0 = int_to_ptr.vmem [resolvable:$true] %s1201_s0 }
  0xba   : > { %1431 = vmatprep.subr.bf16.mxu0 %v1675_v3  ;;  %1507 = vmatprep.subr.bf16.mxu1 %v1676_v4  ;;  %v1681_v9 = vld [vmem:[#allocation9 + $0x58] sm:$0xff]   ;;  %v1682_v10 = vld [vmem:[#allocation9 + $0x90] sm:$0xff]   ;;  %v1684_v12 = vld [vmem:[#allocation9 + $0x60] sm:$0xff]   ;;  %s2460_s17 = sld [smem:[#allocation25_spill]]  ;;  %s1186_s19 = scalar_lea.sflag [#allocation6], %s2290_s4 }
  0xbb   : > { %1508 = vmatpush3.bf16.msra.mxu1 %v1676_v4  ;;  %v1683_v11 = vld [vmem:[#allocation9 + $0x18] sm:$0xff]   ;;  %v1686_v14 = vld [vmem:[#allocation9 + $0x20] sm:$0xff]   ;;  %v1687_v16 = vld [vmem:[#allocation9 + $0x68] sm:$0xff]   ;;  %s1873_s2 = scalar_lea.vmem %s2366_s0, 256  ;;  %s1980_s30 = smov [#allocation13]  }
  0xbc   : > { %1509 = vmatprep.subr.bf16.mxu1 %v1679_v7  ;;  %v1685_v13 = vld [vmem:[#allocation9 + $0x98] sm:$0xff]   ;;  %v1688_v15 = vld [vmem:[#allocation9 + $0xa0] sm:$0xff]   ;;  %v1689_v17 = vld [vmem:[#allocation9 + $0x28] sm:$0xff]   ;;  %p1874_p4 = scmp.ne.s32.totalorder %s2366_s0, %s1873_s2  ;;  %s1877_s15 = sshll.u32 %s1980_s30, 4  ;;  %s1878_s15 = int_to_ptr.vmem [resolvable:$false] %s1877_s15 }
  0xbd   : > { %1432 = vmatpush3.bf16.msra.mxu0 %v1677_v5  ;;  %v1691_v18 = vld [vmem:[#allocation9 + $0xa8] sm:$0xff]   ;;  %v1690_v19 = vld [vmem:[#allocation9 + $0x70] sm:$0xff]   ;;  %v1693_v25 = vld [vmem:[#allocation9 + $0x78] sm:$0xff]   ;;  %p1880_p13 = scmp.lt.s32.totalorder %s2366_s0, %s1878_s15 }
  0xbe   : > { %1433 = vmatprep.subr.bf16.mxu0 %v1678_v6  ;;  %v1692_v20 = vld [vmem:[#allocation9 + $0x30] sm:$0xff]   ;;  %v433_v23 = vld [vmem:[%s370_s24 + $0x8] sm:$0xff]  ;;  %v1697_v30 = vld [vmem:[#allocation10 + $0x40] sm:$0xff]   ;;  %p1875_p8 = pnand %p1874_p4, %p2184_p10 }
  0xbf   : > { %1510 = vmatpush3.bf16.msra.mxu1 %v1679_v7  ;;  %v1694_v21 = vld [vmem:[#allocation9 + $0xb0] sm:$0xff]   ;;  %435 = vst [vmem:[#allocation2 + $0x8] sm:$0xff] %v433_v23  ;;  %v2328_v27 = vld [vmem:[%s379_s7 + $0x8] sm:$0xff]  ;;  %v1698_v31 = vld [vmem:[#allocation10] sm:$0xff]  }
  0xc0   : > { %1511 = vmatprep.subr.bf16.mxu1 %v1682_v10  ;;  %v432_v22 = vld [vmem:[%s370_s24] sm:$0xff]  ;;  %v1695_v28 = vld [vmem:[#allocation9 + $0x38] sm:$0xff]   ;;  %439 = vst [vmem:[#allocation2 + $0x18] sm:$0xff] %v2328_v27  ;;  %v454_v38 = vpack.c.bf16 %v2328_v27, %v2328_v27  ;;  %v1702_v44 = vld [vmem:[#allocation10 + $0x88] sm:$0xff]   ;;  %s2371_s24 = scalar_lea.hbm %s2460_s17, %s1428_s22  ;;  %p1876_p1 = pneg %p1875_p8 }
  0xc1   : > { %1434 = vmatpush3.bf16.msra.mxu0 %v1680_v8  ;;  %v2322_v24 = vld [vmem:[%s379_s7] sm:$0xff]  ;;  %434 = vst [vmem:[#allocation2] sm:$0xff] %v432_v22  ;;  %v1696_v29 = vld [vmem:[#allocation9 + $0xb8] sm:$0xff]   ;;  %v1700_v46 = vld [vmem:[#allocation10 + $0x48] sm:$0xff]   ;;  %s1879_s7 = scalar_lea.vmem %s1878_s15, 512 }
  0xc2   : > { %1435 = vmatprep.subr.bf16.mxu0 %v1681_v9  ;;  %438 = vst [vmem:[#allocation2 + $0x10] sm:$0xff] %v2322_v24  ;;  %v451_v26 = vpack.c.bf16 %v2322_v24, %v433_v23  ;;  %v1699_v40 = vld [vmem:[#allocation10 + $0x80] sm:$0xff]   ;;  %v1705_v45 = vld [vmem:[#allocation10 + $0x90] sm:$0xff]   ;;  %v1701_v47 = vld [vmem:[#allocation10 + $0x8] sm:$0xff]   ;;  %p1881_p3 = scmp.lt.s32.totalorder %s1879_s7, %s1873_s2 }
  0xc3   : > { %1512 = vmatpush3.bf16.msra.mxu1 %v1682_v10  ;;  %v1708_v48 = vld [vmem:[#allocation10 + $0x98] sm:$0xff]   ;;  %v1703_v49 = vld [vmem:[#allocation10 + $0x50] sm:$0xff]   ;;  %v1711_v51 = vld [vmem:[#allocation10 + $0xa0] sm:$0xff]  }
  0xc4   : > { %1513 = vmatprep.subr.bf16.mxu1 %v1685_v13  ;;  %1523 = vmatprep.mubr.bf16.mxu1 %v451_v26  ;;  %v1704_v50 = vld [vmem:[#allocation10 + $0x10] sm:$0xff]   ;;  %v1706_v52 = vld [vmem:[#allocation10 + $0x58] sm:$0xff]   ;;  %v1714_v54 = vld [vmem:[#allocation10 + $0xa8] sm:$0xff]   ;;  %p1882_p5 = por %p1881_p3, %p1880_p13 }
  0xc5   : > { %1436 = vmatpush3.bf16.msra.mxu0 %v1683_v11  ;;  %v1707_v53 = vld [vmem:[#allocation10 + $0x18] sm:$0xff]   ;;  %v1709_v55 = vld [vmem:[#allocation10 + $0x60] sm:$0xff]   ;;  %v1717_v57 = vld [vmem:[#allocation10 + $0xb0] sm:$0xff]  }
  0xc6   : > { %1437 = vmatprep.subr.bf16.mxu0 %v1684_v12  ;;  %v1710_v56 = vld [vmem:[#allocation10 + $0x20] sm:$0xff]   ;;  %v1712_v58 = vld [vmem:[#allocation10 + $0x68] sm:$0xff]   ;;  %v1720_v60 = vld [vmem:[#allocation10 + $0xb8] sm:$0xff]   ;;  %p1883_p11 = pnand %p1882_p5, %p1876_p1 }
  0xc7   : > { %1514 = vmatpush3.bf16.msra.mxu1 %v1685_v13  ;;  %v1713_v59 = vld [vmem:[#allocation10 + $0x28] sm:$0xff]   ;;  %v1715_v61 = vld [vmem:[#allocation10 + $0x70] sm:$0xff]   ;;  %v1718_v63 = vld [vmem:[#allocation10 + $0x78] sm:$0xff]  }
  0xc8   : > { %1515 = vmatprep.subr.bf16.mxu1 %v1688_v15  ;;  %v443_v32 = vld [vmem:[#allocation2 + $0x6] sm:$0xff]  ;;  %v1719_v1 = vld [vmem:[#allocation10 + $0x38] sm:$0xff]   ;;  %v1362_v8 = vld [vmem:[%s2423_s3] ss:$0 sm:$0xff] }
  0xc9   : > { %1438 = vmatpush3.bf16.msra.mxu0 %v1686_v14  ;;  %v444_v33 = vld [vmem:[#allocation2 + $0xe] sm:$0xff]  ;;  %v440_v34 = vld [vmem:[#allocation2 + $0x4] sm:$0xff]  ;;  %v445_v39 = vld [vmem:[#allocation2 + $0x16] sm:$0xff] }
  0xca   : > { %1439 = vmatprep.subr.bf16.mxu0 %v1687_v16  ;;  %v450_v35 = vpack.c.bf16 %v444_v33, %v443_v32  ;;  %v441_v36 = vld [vmem:[#allocation2 + $0xc] sm:$0xff]  ;;  %v453_v41 = vpack.c.bf16 %v445_v39, %v445_v39  ;;  %v442_v42 = vld [vmem:[#allocation2 + $0x14] sm:$0xff]  ;;  %v1722_v33 = vld [vmem:[#allocation12 + $0x8] sm:$0xff]  }
  0xcb   : > { %1516 = vmatpush3.bf16.msra.mxu1 %v1688_v15  ;;  %v449_v37 = vpack.c.bf16 %v441_v36, %v440_v34  ;;  %v452_v43 = vpack.c.bf16 %v442_v42, %v442_v42  ;;  %v1716_v62 = vld [vmem:[#allocation10 + $0x30] sm:$0xff]   ;;  %v1721_v32 = vld [vmem:[#allocation12] sm:$0xff]   ;;  %v1728_v39 = vld [vmem:[#allocation12 + $0x38] sm:$0xff]  }
  0xcc   : > { %1517 = vmatprep.subr.bf16.mxu1 %v1691_v18  ;;  %686 = vmatprep.mubr.bf16.mxu0 %v450_v35  ;;  %v1723_v34 = vld [vmem:[#allocation12 + $0x10] sm:$0xff]   ;;  %v1724_v35 = vld [vmem:[#allocation12 + $0x18] sm:$0xff]   ;;  %v1725_v36 = vld [vmem:[#allocation12 + $0x20] sm:$0xff]  }
  0xcd   : > { %1440 = vmatpush3.bf16.msra.mxu0 %v1689_v17 }
  0xce   : > { %1441 = vmatprep.subr.bf16.mxu0 %v1690_v19 }
  0xcf   : > { %1518 = vmatpush3.bf16.msra.mxu1 %v1691_v18 }
  0xd0   : > { %1519 = vmatprep.subr.bf16.mxu1 %v1694_v21 }
  0xd1   : > { %1442 = vmatpush3.bf16.msra.mxu0 %v1692_v20 }
  0xd2   : > { %1443 = vmatprep.subr.bf16.mxu0 %v1693_v25 }
  0xd3   : > { %1520 = vmatpush3.bf16.msra.mxu1 %v1694_v21 }
  0xd4   : > { %1521 = vmatprep.subr.bf16.mxu1 %v1696_v29 }
  0xd5   : > { %1444 = vmatpush3.bf16.msra.mxu0 %v1695_v28 }
  0xd6   : > { %1467 = vmatprep.subr.bf16.mxu0 %v1697_v30 }
  0xd7   : > { %1522 = vmatpush3.bf16.msra.mxu1 %v1696_v29 }
  0xd8   : > { %687 = vmatmul.mubr.bf16.vlgmr.msra.gmra.mrb[0].mxu0 %v449_v37  ;;  %1527 = vmatprep.subr.bf16.mxu1 %v1978_v0  ;;  %v1726_v37 = vld [vmem:[#allocation12 + $0x28] sm:$0xff]  }
  0xd9   : > { %694 = vmatprep.mubr.bf16.mxu0 %v453_v41  ;;  %1468 = vmatpush3.bf16.msra.mxu0 %v1698_v31 }
  0xda   : > { %1524 = vmatmul.mubr.bf16.vlgmr.msra.gmra.mrb[0].mxu1 %v454_v38  ;;  %1469 = vmatprep.subr.bf16.mxu0 %v1700_v46  ;;  %v1727_v38 = vld [vmem:[#allocation12 + $0x30] sm:$0xff]   ;;  %v1387_v46 = vld [vmem:[%s2425_s5] ss:$0 sm:$0xff] }
  0xdb   : > { %1528 = vmatpush3.bf16.msra.mxu1 %v1699_v40  ;;  %1543 = vmatprep.mubr.msk.bf16.mxu1 %vm1979_vm0, %v1978_v0  ;;  %v1066_v40 = vpack.c.bf16 %v2328_v27, %v2322_v24 }
  0xdc   : > { %1529 = vmatprep.subr.bf16.mxu1 %v1978_v0 }
  0xdd   : > { %1470 = vmatpush3.bf16.msra.mxu0 %v1701_v47 }
  0xde   : > { %1471 = vmatprep.subr.bf16.mxu0 %v1703_v49 }
  0xdf   : > { %1530 = vmatpush3.bf16.msra.mxu1 %v1702_v44 }
  0xe0   : > { %695 = vmatmul.mubr.bf16.gmra.mrb[4].mxu0 %v452_v43  ;;  %1531 = vmatprep.subr.bf16.mxu1 %v1978_v0 }
  0xe1   : > { %1472 = vmatpush3.bf16.msra.mxu0 %v1704_v50 }
  0xe2   : > { %1473 = vmatprep.subr.bf16.mxu0 %v1706_v52 }
  0xe3   : > { %1532 = vmatpush3.bf16.msra.mxu1 %v1705_v45 }
  0xe4   : > { %1533 = vmatprep.subr.bf16.mxu1 %v1978_v0 }
  0xe5   : > { %1474 = vmatpush3.bf16.msra.mxu0 %v1707_v53  ;;  %v1412_v53 = vld [vmem:[%s2459_s20] ss:$0 sm:$0xff] }
  0xe6   : > { %1475 = vmatprep.subr.bf16.mxu0 %v1709_v55 }
  0xe7   : > { %1534 = vmatpush3.bf16.msra.mxu1 %v1708_v48 }
  0xe8   : > { %1535 = vmatprep.subr.bf16.mxu1 %v1978_v0 }
  0xe9   : > { %1476 = vmatpush3.bf16.msra.mxu0 %v1710_v56 }
  0xea   : > { %1477 = vmatprep.subr.bf16.mxu0 %v1712_v58 }
  0xeb   : > { %1536 = vmatpush3.bf16.msra.mxu1 %v1711_v51 }
  0xec   : > { %1537 = vmatprep.subr.bf16.mxu1 %v1978_v0 }
  0xed   : > { %1478 = vmatpush3.bf16.msra.mxu0 %v1713_v59 }
  0xee   : > { %1479 = vmatprep.subr.bf16.mxu0 %v1715_v61 }
  0xef   : > { %1538 = vmatpush3.bf16.msra.mxu1 %v1714_v54 }
  0xf0   : > { %1539 = vmatprep.subr.bf16.mxu1 %v1978_v0 }
  0xf1   : > { %1480 = vmatpush3.bf16.msra.mxu0 %v1716_v62 }
  0xf2   : > { %1481 = vmatprep.subr.bf16.mxu0 %v1718_v63 }
  0xf3   : > { %1540 = vmatpush3.bf16.msra.mxu1 %v1717_v57 }
  0xf4   : > { %1541 = vmatprep.subr.bf16.mxu1 %v1978_v0 }
  0xf5   : > { %1482 = vmatpush3.bf16.msra.mxu0 %v1719_v1 }
  0xf6   : > { %1547 = vmatprep.subr.bf16.mxu0 %v1978_v0 }
  0xf7   : > { %1542 = vmatpush3.bf16.msra.mxu1 %v1720_v60 }
 0x1ab   : > { %v1445_v2 = vpop.f32.mrb[0].mxu0 }
 0x1ac   : > { %v1446_v3 = vpop.f32.mrb[1].mxu0 }
 0x1ad   : > { %v1448_v4 = vpop.f32.mrb[2].mxu0  ;;  %v1525_v5 = vpop.f32.mrb[0].mxu1 }
 0x1ae   : > { %v1449_v6 = vpop.f32.mrb[3].mxu0  ;;  %v736_v7 = vpop.f32.mrb[1].mxu1 }
 0x1af   : > { %v1450_v9 = vadd.f32 %v1449_v6, %v1448_v4  ;;  %v1526_v10 = vpop.f32.mrb[2].mxu1 }
 0x1b0   : > { %v739_v11 = vpop.f32.mrb[3].mxu1 }
 0x1b1   : > { %v692_v12 = vadd.f32 %v1450_v9, %v1362_v8 }
 0x1b3   : > { %v740_v13 = vadd.f32 %v739_v11, %v692_v12  ;;  %v1451_v14 = vpop.f32.mrb[4].mxu0 }
 0x1b4   : > { %v1452_v15 = vpop.f32.mrb[5].mxu0 }
 0x1b5   : > { %v751_v16 = vmax.f32 %v740_v13, 0.0  ;;  %v1453_v17 = vadd.f32 %v1452_v15, %v1451_v14  ;;  %v1454_v18 = vpop.f32.mrb[6].mxu0 }
 0x1b6   : > { %v1455_v19 = vpop.f32.mrb[7].mxu0 }
 0x1b7   : > { %770 = vst [vmem:[#allocation3 + $0x8] sm:$0xff] %v751_v16  ;;  %v697_v20 = vadd.f32 %v1453_v17, %v1362_v8 }
 0x1b9   : > { %v745_v21 = vadd.f32 %v1525_v5, %v697_v20 }
 0x1bb   : > { %v752_v22 = vmax.f32 %v745_v21, 0.0 }
 0x1bd   : > { %771 = vst [vmem:[#allocation3 + $0x10] sm:$0xff] %v752_v22  ;;  %v780_v23 = vpack.c.bf16 %v752_v22, %v751_v16 }
 0x1be   : > { %v774_v25 = vld [vmem:[#allocation3 + $0x6] sm:$0xff] }
 0x1bf   : > { %1544 = vmatmul.mubr.bf16.vlgmr.msra.gmra.mrb[4].mxu1 %v780_v23  ;;  %v772_v28 = vld [vmem:[#allocation3 + $0x4] sm:$0xff] }
 0x1c4   : > { %v775_v26 = vld [vmem:[#allocation3 + $0xe] sm:$0xff] }
 0x1c5   : > { %v773_v29 = vld [vmem:[#allocation3 + $0xc] sm:$0xff]  ;;  %v779_v30 = vpack.c.bf16 %v775_v26, %v774_v25 }
 0x1c6   : > { %v778_v31 = vpack.c.bf16 %v773_v29, %v772_v28 }
 0x1c7   : > { %1012 = vmatprep.mubr.bf16.mxu0 %v779_v30 }
 0x1c8   : > { %1013 = vmatmul.mubr.bf16.vlgmr.msra.gmra.mrb[8].mxu0 %v778_v31 }
 0x1c9   : > { %1548 = vmatpush3.bf16.msra.mxu0 %v1721_v32  ;;  %1563 = vmatprep.mubr.msk.bf16.mxu0 %vm1979_vm0, %v1978_v0 }
 0x1ca   : > { %1549 = vmatprep.subr.bf16.mxu0 %v1978_v0 }
 0x1cd   : > { %1550 = vmatpush3.bf16.msra.mxu0 %v1722_v33 }
 0x1ce   : > { %1551 = vmatprep.subr.bf16.mxu0 %v1978_v0 }
 0x1d1   : > { %1552 = vmatpush3.bf16.msra.mxu0 %v1723_v34 }
 0x1d2   : > { %1553 = vmatprep.subr.bf16.mxu0 %v1978_v0 }
 0x1d5   : > { %1554 = vmatpush3.bf16.msra.mxu0 %v1724_v35 }
 0x1d6   : > { %1555 = vmatprep.subr.bf16.mxu0 %v1978_v0 }
 0x1d9   : > { %1556 = vmatpush3.bf16.msra.mxu0 %v1725_v36 }
 0x1da   : > { %1557 = vmatprep.subr.bf16.mxu0 %v1978_v0 }
 0x1dd   : > { %1558 = vmatpush3.bf16.msra.mxu0 %v1726_v37 }
 0x1de   : > { %1559 = vmatprep.subr.bf16.mxu0 %v1978_v0 }
 0x1e1   : > { %1560 = vmatpush3.bf16.msra.mxu0 %v1727_v38 }
 0x1e2   : > { %1561 = vmatprep.subr.bf16.mxu0 %v1978_v0 }
 0x1e5   : > { %1562 = vmatpush3.bf16.msra.mxu0 %v1728_v39 }
 0x1e8   : > { %1564 = vmatmul.mubr.bf16.vlgmr.msra.gmra.mrb[12].mxu0 %v1066_v40 }
 0x292   : > { %v1055_v41 = vpop.f32.mrb[4].mxu1 }
 0x293   : > { %v1545_v42 = vpop.f32.mrb[5].mxu1 }
 0x294   : > { %v1058_v43 = vpop.f32.mrb[6].mxu1 }
 0x295   : > { %v1546_v44 = vpop.f32.mrb[7].mxu1 }
 0x29b   : > { %v1483_v45 = vpop.f32.mrb[8].mxu0 }
 0x29c   : > { %v1484_v47 = vpop.f32.mrb[9].mxu0 }
 0x29d   : > { %v1485_v48 = vadd.f32 %v1484_v47, %v1483_v45  ;;  %v1486_v49 = vpop.f32.mrb[10].mxu0 }
 0x29e   : > { %v1487_v50 = vpop.f32.mrb[11].mxu0 }
 0x29f   : > { %v1015_v0 = vadd.f32 %v1485_v48, %v1387_v46  ;;  %v1488_v51 = vadd.f32 %v1487_v50, %v1486_v49 }
 0x2a1   : > { %v1056_v24 = vadd.f32 %v1055_v41, %v1015_v0  ;;  %v1018_v27 = vadd.f32 %v1488_v51, %v1387_v46 }
 0x2a3   : > { %v1059_v52 = vadd.f32 %v1058_v43, %v1018_v27  ;;  %v1062_v55 = vmax.f32 %v1056_v24, 0.0 }
 0x2a5   : > { %v1063_v60 = vmax.f32 %v1059_v52, 0.0 }
 0x2bb   : > { %v1172_v54 = vpop.f32.mrb[12].mxu0 }
 0x2bc   : > { %v1173_v56 = vadd.f32 %v1412_v53, %v1172_v54  ;;  %v1565_v57 = vpop.f32.mrb[13].mxu0 }
 0x2bd   : > { %v1175_v58 = vpop.f32.mrb[14].mxu0 }
 0x2be   : > { %v1179_v59 = vadd.f32 %v1173_v56, %v1062_v55  ;;  %v1176_v61 = vadd.f32 %v1412_v53, %v1175_v58  ;;  %v1566_v62 = vpop.f32.mrb[15].mxu0 }
 0x2c0   : > { %v1181_v63 = vmax.f32 %v1179_v59, 0.0  ;;  %v1180_v1 = vadd.f32 %v1176_v61, %v1063_v60 }
 0x2c2   : > { %1183 = vst [vmem:[%s428_s21] sm:$0xff] %v1181_v63  ;;  %v1182_v2 = vmax.f32 %v1180_v1, 0.0 }
 0x2c4   : > { %1184 = vst [vmem:[%s428_s21 + $0x8] sm:$0xff] %v1182_v2 }
 0x2c5   : > { %1886 = shalt.err (!%p1883_p11)
}
 0x2c6   : > { %s1887_s11 = scalar_lea.hbm %s2371_s24, 256  ;;  %s1891_s18 = scalar_lea.hbm %s2460_s17, 512 }
 0x2c7   : > { %p1888_p12 = scmp.ne.s32.totalorder %s2371_s24, %s1887_s11  ;;  %p1892_p9 = scmp.lt.u32.totalorder %s2371_s24, %s2460_s17 }
 0x2c8   : > { %p1893_p0 = scmp.lt.u32.totalorder %s1891_s18, %s1887_s11  ;;  %p1895_p4 = scmp.lt.u32.totalorder %s1887_s11, %s2371_s24 }
 0x2c9   : > { %p1889_p6 = pnand %p1888_p12, %p2184_p10 }
 0x2ca   : > { %p1894_p2 = por %p1893_p0, %p1892_p9 }
 0x2cb   : > { %p1890_p7 = pneg %p1889_p6 }
 0x2cc   : > { %p1896_p8 = por %p1895_p4, %p1894_p2 }
 0x2ce   : > { %p1897_p1 = pnand %p1896_p8, %p1890_p7 }
 0x2d0   : > { %1900 = shalt.err (!%p1897_p1)
}
 0x2d1   : > { %s1981_s20 = smov 128   ;;  %s1982_s21 = smov 8  }
 0x2d2   : > { %1583 = dma.vmem_to_hbm [thread:$0]  (%p2184_p10), %s2366_s0, 256, %s2371_s24, %s1186_s19, %s1981_s20, %s1981_s20, %s1982_s21  }
 0x2d3 PF: > { %s2461_s22 = sld [smem:[#allocation19_spill]]  ;;  %s2462_s27 = sld [smem:[#allocation20_spill]] }
 0x2d4   : > { %p2464_p3 = scmp.ge.s32.totalorder %s1967_s10, 2 }
 0x2d9   : > { %s1216_s14 = sand.u32 1, %s2461_s22   ;;  %p2463_p13 = scmp.ne.s32.totalorder %s2462_s27, 0 }
 0x2da   : > { %s1217_s2 = scalar_lea.sflag [#allocation6], %s1216_s14 }
 0x2db   : > { %p1603_p5 = pnand %p2464_p3, %p2463_p13 }
 0x2dd   : > { %1942 = dma.done.wait (!%p1603_p5), %s1217_s2, 256  }
 0x2de   : > { %1944 = vsyncadd (!%p1603_p5), %s1217_s2, 4294967040  ;;  %s28_s10 = sadd.s32 1, %s1967_s10   ;;  %s2465_s27 = smov %s1951_s28 }
 0x2df   : > { %p25_p11 = scmp.ge.s32.totalorder %s28_s10, 4   ;;  %s2466_s28 = smov %s1955_s29 }
 0x2e0   : > { %s2467_s29 = smov %s2198_s25  ;;  %s2468_s30 = smov %s1963_s9 }
 0x2e1   : > { %s2469_s9 = smov %s2471_s16  ;;  %27 = sbr.rel (!%p25_p11) target bundleno = 15 (0xf), region = 122 }
 0x2e8   :  { %1222 = vsyncpa [#allocation5], 1 }
 0x2e9   :  { %1224 = vsyncpa [#allocation5 + $0x1], 1 }
 0x2ea   :  { %1225 = vsyncpa [#allocation8], 1 }
 0x2eb   :  { %1227 = vsyncpa [#allocation8 + $0x1], 1 }
 0x2ec   :  { %1228 = vsyncpa [#allocation11], 1 }
 0x2ed   :  { %1229 = vsyncpa [#allocation6], 1 }
 0x2ee   :  { %1231 = vsyncpa [#allocation6 + $0x1], 1 }

</bundles_post_ra>
